<compile_context>
chip_gen: v5e
topology: v5e:2x2
jax: 0.10.0
libtpu: 0.0.40
codegen_flags: <defaults>
</compile_context>

<pallas_src>
import functools

import jax
import jax.numpy as jnp
from jax.experimental import pallas as pl
from jax.experimental.pallas import tpu as pltpu

_LANE = 128
_SUBLANE = 8


def _round_up(x, m):
    return ((x + m - 1) // m) * m


def _mlp_kernel(n_layers, feat_pad, compute_dtype, x_ref, slab_ref, o_ref):
    """Fused MLP over one batch tile, everything padded to 128 lanes.

    slab_ref: [L, feat_pad + 8, feat_pad]; for layer l, rows [0, feat_pad) hold
    the zero-padded weight matrix W_l ([in, out] layout) and row feat_pad holds
    the zero-padded bias.  Remaining rows are zero (sublane alignment).
    """
    h = x_ref[...]                                   # (TB, P), compute dtype
    for layer in range(n_layers):
        w = slab_ref[layer, :feat_pad, :]            # (P, P), compute dtype
        b = slab_ref[layer, feat_pad:feat_pad + 1, :]  # (1, P)
        acc = jnp.dot(h.astype(compute_dtype), w,
                      preferred_element_type=jnp.float32)
        h = acc + b.astype(jnp.float32)              # bias-add / ReLU in f32 (v5e safe)
        if layer != n_layers - 1:
            h = jnp.maximum(h, 0.0)
    o_ref[...] = h.astype(o_ref.dtype)


def _pack_params(params, feat_pad, dtype):
    """Pack all (W, b) pairs into one zero-padded [L, feat_pad+8, feat_pad] slab."""
    n_layers = len(params)
    slab = jnp.zeros((n_layers, feat_pad + _SUBLANE, feat_pad), jnp.float32)
    for l, (w, b) in enumerate(params):
        d_in, d_out = w.shape
        slab = slab.at[l, :d_in, :d_out].set(w)
        slab = slab.at[l, feat_pad, :d_out].set(b.reshape(-1))
    return slab.astype(dtype)


def critic_forward(x, params, *, compute_dtype=jnp.float32, block_batch=512):
    """Pallas implementation of Critic.forward.

    Args:
      x: [B, input_dim] float32
      params: list of (W [in, out], b [1, out]) float32 tuples, one per Linear.
      compute_dtype: matmul operand dtype (jnp.float32 or jnp.bfloat16);
        accumulation / bias / ReLU always run in float32.
      block_batch: batch tile size (rows per grid step).

    Returns:
      (q_values [B, output_dim] float32, None)   -- matches (self.net(x), None)
    """
    n_layers = len(params)
    in_dim = params[0][0].shape[0]
    out_dim = params[-1][0].shape[1]
    B = x.shape[0]

    # Pad every feature dim (input / hidden / output) to a full 128-lane width.
    feat_pad = _round_up(max([in_dim] + [w.shape[1] for (w, _) in params]), _LANE)

    slab = _pack_params(params, feat_pad, compute_dtype)

    # Batch tile: respect sublane packing of compute_dtype (8 rows f32, 16 bf16).
    row_align = 32 // jnp.dtype(compute_dtype).itemsize
    tb = min(block_batch, _round_up(B, row_align))
    tb = _round_up(tb, row_align)
    b_pad = _round_up(B, tb)
    grid = (b_pad // tb,)

    xp = jnp.pad(x.astype(compute_dtype),
                 ((0, b_pad - B), (0, feat_pad - in_dim)))

    itemsize = jnp.dtype(compute_dtype).itemsize
    flops = 2 * b_pad * feat_pad * feat_pad * n_layers
    bytes_accessed = (b_pad * feat_pad * itemsize            # x
                      + slab.size * itemsize                 # packed params
                      + b_pad * feat_pad * 4)                # f32 output
    cost = pl.CostEstimate(flops=flops, transcendentals=0,
                           bytes_accessed=bytes_accessed)

    out_padded = pl.pallas_call(
        functools.partial(_mlp_kernel, n_layers, feat_pad, compute_dtype),
        out_shape=jax.ShapeDtypeStruct((b_pad, feat_pad), jnp.float32),
        grid=grid,
        in_specs=[
            # x: pipelined over the batch grid.
            pl.BlockSpec((tb, feat_pad), lambda i: (i, 0)),
            # packed parameter slab: resident across all grid iterations.
            pl.BlockSpec((n_layers, feat_pad + _SUBLANE, feat_pad),
                         lambda i: (0, 0, 0)),
        ],
        out_specs=pl.BlockSpec((tb, feat_pad), lambda i: (i, 0)),
        compiler_params=pltpu.CompilerParams(
            dimension_semantics=("parallel",),          # shard batch across TCs (v7x)
            vmem_limit_bytes=32 * 1024 * 1024,          # explicit; safe on 64 MiB v7x
        ),
        cost_estimate=cost,
    )(xp, slab)

    q = out_padded[:B, :out_dim]
    hidden = None
    return q, hidden


def init_critic_params(key, input_dim, output_dim, hidden_dim, hidden_depth):
    """Deterministic synthetic init matching build_mlp layer shapes."""
    if hidden_depth == 0:
        dims = [(input_dim, output_dim)]
    else:
        dims = [(input_dim, hidden_dim)]
        for _ in range(hidden_depth - 1):
            dims.append((hidden_dim, hidden_dim))
        dims.append((hidden_dim, output_dim))

    params = []
    for (d_in, d_out) in dims:
        key, kw, kb = jax.random.split(key, 3)
        scale = 1.0 / jnp.sqrt(jnp.float32(d_in))
        w = jax.random.uniform(kw, (d_in, d_out), jnp.float32, -scale, scale)
        b = jax.random.uniform(kb, (1, d_out), jnp.float32, -scale, scale)
        params.append((w, b))
    return params


def _reference_forward(x, params, compute_dtype=jnp.float32):
    """Pure-JAX reference mirroring the kernel's dtype handling."""
    h = x.astype(jnp.float32)
    for i, (w, b) in enumerate(params):
        acc = jnp.dot(h.astype(compute_dtype), w.astype(compute_dtype),
                      preferred_element_type=jnp.float32)
        h = acc + b.astype(compute_dtype).astype(jnp.float32)
        if i != len(params) - 1:
            h = jnp.maximum(h, 0.0)
    return h


if __name__ == "__main__":
    # Small shapes consistent with the module:
    #   preprocess_net.output_dim = 32, hidden_dim = 32, hidden_depth = 2,
    #   output_dim = 1, batch = 8.
    B, INPUT_DIM, HIDDEN_DIM, HIDDEN_DEPTH, OUTPUT_DIM = 8, 32, 32, 2, 1

    key = jax.random.PRNGKey(0)
    key, kx = jax.random.split(key)
    x = jax.random.normal(kx, (B, INPUT_DIM), jnp.float32)
    params = init_critic_params(key, INPUT_DIM, OUTPUT_DIM, HIDDEN_DIM, HIDDEN_DEPTH)

    # 1) f32, tiny batch (single grid step).
    q, hidden = critic_forward(x, params)
    q = jax.block_until_ready(q)
    ref = _reference_forward(x, params)
    assert q.shape == (B, OUTPUT_DIM)
    assert hidden is None
    assert jnp.allclose(q, ref, atol=1e-5, rtol=1e-5)

    # 2) f32, batch not a multiple of the tile -> multi-step pipelined grid.
    key, kx2 = jax.random.split(key)
    x2 = jax.random.normal(kx2, (200, INPUT_DIM), jnp.float32)
    q2, _ = critic_forward(x2, params, block_batch=64)
    q2 = jax.block_until_ready(q2)
    ref2 = _reference_forward(x2, params)
    assert q2.shape == (200, OUTPUT_DIM)
    assert jnp.allclose(q2, ref2, atol=1e-5, rtol=1e-5)

    # 3) bf16 weights/activations (v6e/v7x fast path), f32 accumulation.
    q3, _ = critic_forward(x, params, compute_dtype=jnp.bfloat16)
    q3 = jax.block_until_ready(q3)
    ref3 = _reference_forward(x, params, compute_dtype=jnp.bfloat16)
    assert jnp.allclose(q3, ref3, atol=1e-2, rtol=1e-2)
    assert jnp.allclose(q3, ref, atol=5e-2, rtol=5e-2)

    print("KERNEL_OK")
</pallas_src>

<mosaic_0001>
module attributes {stable_mosaic.version = 11 : i64} {
  func.func @_mlp_kernel(%arg0: i32, %arg1: memref<8x128xf32, #tpu.memory_space<vmem>>, %arg2: memref<3x136x128xf32, #tpu.memory_space<vmem>>, %arg3: memref<8x128xf32, #tpu.memory_space<vmem>>) attributes {dimension_semantics = [#tpu.dimension_semantics<parallel>], iteration_bounds = array<i64: 1>, scalar_prefetch = 0 : i64, scratch_operands = 0 : i64, tpu.core_type = #tpu.core_type<tc>, window_params = [{transform_indices = @transform_0, window_bounds = array<i64: 8, 128>}, {pipeline_mode = #tpu.pipeline_mode<synchronous>, transform_indices = @transform_1, window_bounds = array<i64: 3, 136, 128>}, {transform_indices = @transform_2, window_bounds = array<i64: 8, 128>}]} {
    %c0 = arith.constant 0 : index
    %c0_0 = arith.constant 0 : index
    %0 = vector.load %arg1[%c0, %c0_0] : memref<8x128xf32, #tpu.memory_space<vmem>>, vector<8x128xf32>
    %c0_1 = arith.constant 0 : index
    %c0_2 = arith.constant 0 : index
    %c0_3 = arith.constant 0 : index
    %1 = vector.load %arg2[%c0_1, %c0_2, %c0_3] : memref<3x136x128xf32, #tpu.memory_space<vmem>>, vector<1x128x128xf32>
    %2 = vector.shape_cast %1 : vector<1x128x128xf32> to vector<128x128xf32>
    %c0_4 = arith.constant 0 : index
    %c128 = arith.constant 128 : index
    %c0_5 = arith.constant 0 : index
    %3 = vector.load %arg2[%c0_4, %c128, %c0_5] : memref<3x136x128xf32, #tpu.memory_space<vmem>>, vector<1x1x128xf32>
    %4 = vector.shape_cast %3 : vector<1x1x128xf32> to vector<1x128xf32>
    %cst = arith.constant dense<0.000000e+00> : vector<8x128xf32>
    %5 = tpu.matmul %0, %2, %cst {dimension_numbers = #tpu.dot_dimension_numbers<[1], [0], [0], [1], [0, 0, 1, 1], [], []>} : vector<8x128xf32>, vector<128x128xf32>, vector<8x128xf32> -> vector<8x128xf32>
    %6 = vector.broadcast %4 : vector<1x128xf32> to vector<8x128xf32>
    %7 = arith.addf %5, %6 : vector<8x128xf32>
    %cst_6 = arith.constant 0.000000e+00 : f32
    %8 = vector.broadcast %cst_6 : f32 to vector<8x128xf32>
    %9 = arith.maximumf %7, %8 : vector<8x128xf32>
    %c1 = arith.constant 1 : index
    %c0_7 = arith.constant 0 : index
    %c0_8 = arith.constant 0 : index
    %10 = vector.load %arg2[%c1, %c0_7, %c0_8] : memref<3x136x128xf32, #tpu.memory_space<vmem>>, vector<1x128x128xf32>
    %11 = vector.shape_cast %10 : vector<1x128x128xf32> to vector<128x128xf32>
    %c1_9 = arith.constant 1 : index
    %c128_10 = arith.constant 128 : index
    %c0_11 = arith.constant 0 : index
    %12 = vector.load %arg2[%c1_9, %c128_10, %c0_11] : memref<3x136x128xf32, #tpu.memory_space<vmem>>, vector<1x1x128xf32>
    %13 = vector.shape_cast %12 : vector<1x1x128xf32> to vector<1x128xf32>
    %cst_12 = arith.constant dense<0.000000e+00> : vector<8x128xf32>
    %14 = tpu.matmul %9, %11, %cst_12 {dimension_numbers = #tpu.dot_dimension_numbers<[1], [0], [0], [1], [0, 0, 1, 1], [], []>} : vector<8x128xf32>, vector<128x128xf32>, vector<8x128xf32> -> vector<8x128xf32>
    %15 = vector.broadcast %13 : vector<1x128xf32> to vector<8x128xf32>
    %16 = arith.addf %14, %15 : vector<8x128xf32>
    %cst_13 = arith.constant 0.000000e+00 : f32
    %17 = vector.broadcast %cst_13 : f32 to vector<8x128xf32>
    %18 = arith.maximumf %16, %17 : vector<8x128xf32>
    %c2 = arith.constant 2 : index
    %c0_14 = arith.constant 0 : index
    %c0_15 = arith.constant 0 : index
    %19 = vector.load %arg2[%c2, %c0_14, %c0_15] : memref<3x136x128xf32, #tpu.memory_space<vmem>>, vector<1x128x128xf32>
    %20 = vector.shape_cast %19 : vector<1x128x128xf32> to vector<128x128xf32>
    %c2_16 = arith.constant 2 : index
    %c128_17 = arith.constant 128 : index
    %c0_18 = arith.constant 0 : index
    %21 = vector.load %arg2[%c2_16, %c128_17, %c0_18] : memref<3x136x128xf32, #tpu.memory_space<vmem>>, vector<1x1x128xf32>
    %22 = vector.shape_cast %21 : vector<1x1x128xf32> to vector<1x128xf32>
    %cst_19 = arith.constant dense<0.000000e+00> : vector<8x128xf32>
    %23 = tpu.matmul %18, %20, %cst_19 {dimension_numbers = #tpu.dot_dimension_numbers<[1], [0], [0], [1], [0, 0, 1, 1], [], []>} : vector<8x128xf32>, vector<128x128xf32>, vector<8x128xf32> -> vector<8x128xf32>
    %24 = vector.broadcast %22 : vector<1x128xf32> to vector<8x128xf32>
    %25 = arith.addf %23, %24 : vector<8x128xf32>
    %c0_20 = arith.constant 0 : index
    %c0_21 = arith.constant 0 : index
    %26 = vector.load %arg3[%c0_20, %c0_21] : memref<8x128xf32, #tpu.memory_space<vmem>>, vector<8x128xf32>
    tpu.vector_store %arg3[%c0_20, %c0_21], %25 {strides = array<i32>} : memref<8x128xf32, #tpu.memory_space<vmem>>, vector<8x128xf32>,
    return
  }
  func.func @transform_0(%arg0: i32) -> (i32, i32) {
    %c0_i32 = arith.constant 0 : i32
    %c0_i32_0 = arith.constant 0 : i32
    return %arg0, %c0_i32 : i32, i32
  }
  func.func @transform_1(%arg0: i32) -> (i32, i32, i32) {
    %c0_i32 = arith.constant 0 : i32
    %c0_i32_0 = arith.constant 0 : i32
    %c0_i32_1 = arith.constant 0 : i32
    %c0_i32_2 = arith.constant 0 : i32
    return %c0_i32, %c0_i32_0, %c0_i32_1 : i32, i32, i32
  }
  func.func @transform_2(%arg0: i32) -> (i32, i32) {
    %c0_i32 = arith.constant 0 : i32
    %c0_i32_0 = arith.constant 0 : i32
    return %arg0, %c0_i32 : i32, i32
  }
}

</mosaic_0001>

<bundles_post_ra>
// kernel: tpu_custom_call.1
= control target key start
LH: loop header
LB: loop body
LE: loop exit
PB: predicated region body
PF: predicated region fallthrough
CT: control target
= control target key end

     0   :  { %7 = vsyncpa [#allocation3], 0  ;;  %s295_s0 = inlined_call_operand.hbm [shape: f32[8,128], index: 0, kind: input, shape index: {}]   ;;  %s296_s1 = inlined_call_operand.hbm [shape: f32[3,136,128], index: 1, kind: input, shape index: {}]   ;;  %s297_s2 = inlined_call_operand.hbm [shape: f32[8,128], index: 2, kind: output, shape index: {}]  }
   0x1   :  { %8 = vsyncpa [#allocation6], 0 }
   0x2   :  { %9 = vsyncpa [#allocation4], 0  ;;  %s15_s11 = sshll.u32 %s295_s0, 4  ;;  %s266_s12 = smov [#allocation2]   ;;  %s16_s11 = int_to_ptr.hbm [resolvable:$true] %s15_s11 }
   0x3   :  { %s17_s13 = sshll.u32 %s266_s12, 4  ;;  %s25_s16 = sshll.u32 %s296_s1, 4  ;;  %s18_s13 = int_to_ptr.vmem [resolvable:$true] %s17_s13  ;;  %s26_s16 = int_to_ptr.hbm [resolvable:$true] %s25_s16 }
   0x4   :  { %20 = dma.hbm_to_vmem [thread:$0]  %s16_s11, 128, %s18_s13, [#allocation3]  }
   0x5   :  { %s267_s17 = smov [#allocation5]   ;;  %s268_s19 = smov 128  }
   0x6   :  { %s27_s18 = sshll.u32 %s267_s17, 4  ;;  %s269_s20 = smov 8   ;;  %s28_s18 = int_to_ptr.vmem [resolvable:$true] %s27_s18 }
   0x7   :  { %33 = dma.hbm_to_vmem [thread:$0]  %s26_s16, 6528, %s28_s18, [#allocation6], %s268_s19, %s268_s19, %s269_s20  }
   0x8   :  { %260 = dma.done.wait [#allocation3], 128  }
   0x9   :  { %261 = vsyncadd [#allocation3], 4294967168 }
   0xa   :  { %262 = dma.done.wait [#allocation6], 6528  }
   0xb   :  { %263 = vsyncadd [#allocation6], 4294960768  ;;  %v58_v0 = vld [vmem:[#allocation5 + $0x78] sm:$0xff]  ;;  %v57_v1 = vld [vmem:[#allocation5 + $0x70] sm:$0xff]  ;;  %s270_s0 = smov [#allocation7]   ;;  %s169_s23 = sshll.u32 %s297_s2, 4  ;;  %s170_s23 = int_to_ptr.hbm [resolvable:$true] %s169_s23 }
   0xc   :  { %61 = vmatpush.msra.mxu0 %v58_v0  ;;  %v56_v2 = vld [vmem:[#allocation5 + $0x68] sm:$0xff]  ;;  %v55_v3 = vld [vmem:[#allocation5 + $0x60] sm:$0xff]  ;;  %v54_v5 = vld [vmem:[#allocation5 + $0x58] sm:$0xff]  ;;  %s167_s1 = sshll.u32 %s270_s0, 4  ;;  %s168_s1 = int_to_ptr.vmem [resolvable:$true] %s167_s1 }
   0xd   :  { %v98_v4 = vld [vmem:[#allocation5 + $0x100] sm:$0xff]  ;;  %v97_v6 = vld [vmem:[#allocation5 + $0xf8] sm:$0xff]  ;;  %v96_v7 = vld [vmem:[#allocation5 + $0xf0] sm:$0xff] }
   0xe   :  { %62 = vmatpush.msra.mxu0 %v57_v1  ;;  %101 = vmatpush.msra.mxu1 %v98_v4  ;;  %v53_v8 = vld [vmem:[#allocation5 + $0x50] sm:$0xff]  ;;  %v95_v9 = vld [vmem:[#allocation5 + $0xe8] sm:$0xff]  ;;  %v94_v11 = vld [vmem:[#allocation5 + $0xe0] sm:$0xff] }
   0xf   :  { %v52_v10 = vld [vmem:[#allocation5 + $0x48] sm:$0xff]  ;;  %v51_v12 = vld [vmem:[#allocation5 + $0x40] sm:$0xff]  ;;  %v93_v13 = vld [vmem:[#allocation5 + $0xd8] sm:$0xff] }
  0x10   :  { %63 = vmatpush.msra.mxu0 %v56_v2  ;;  %102 = vmatpush.msra.mxu1 %v97_v6  ;;  %v50_v14 = vld [vmem:[#allocation5 + $0x38] sm:$0xff]  ;;  %v92_v15 = vld [vmem:[#allocation5 + $0xd0] sm:$0xff]  ;;  %v91_v17 = vld [vmem:[#allocation5 + $0xc8] sm:$0xff] }
  0x11   :  { %v49_v16 = vld [vmem:[#allocation5 + $0x30] sm:$0xff]  ;;  %v48_v18 = vld [vmem:[#allocation5 + $0x28] sm:$0xff]  ;;  %v90_v19 = vld [vmem:[#allocation5 + $0xc0] sm:$0xff] }
  0x12   :  { %64 = vmatpush.msra.mxu0 %v55_v3  ;;  %103 = vmatpush.msra.mxu1 %v96_v7  ;;  %v47_v20 = vld [vmem:[#allocation5 + $0x20] sm:$0xff]  ;;  %v89_v21 = vld [vmem:[#allocation5 + $0xb8] sm:$0xff]  ;;  %v88_v23 = vld [vmem:[#allocation5 + $0xb0] sm:$0xff] }
  0x13   :  { %v46_v22 = vld [vmem:[#allocation5 + $0x18] sm:$0xff]  ;;  %v45_v24 = vld [vmem:[#allocation5 + $0x10] sm:$0xff]  ;;  %v87_v25 = vld [vmem:[#allocation5 + $0xa8] sm:$0xff] }
  0x14   :  { %65 = vmatpush.msra.mxu0 %v54_v5  ;;  %104 = vmatpush.msra.mxu1 %v95_v9  ;;  %v44_v26 = vld [vmem:[#allocation5 + $0x8] sm:$0xff]  ;;  %v86_v27 = vld [vmem:[#allocation5 + $0xa0] sm:$0xff]  ;;  %v42_v29 = vld [vmem:[#allocation2] sm:$0xff] }
  0x15   :  { %v43_v28 = vld [vmem:[#allocation5] sm:$0xff]  ;;  %v85_v30 = vld [vmem:[#allocation5 + $0x98] sm:$0xff]  ;;  %v84_v31 = vld [vmem:[#allocation5 + $0x90] sm:$0xff] }
  0x16   :  { %66 = vmatpush.msra.mxu0 %v53_v8  ;;  %105 = vmatpush.msra.mxu1 %v94_v11  ;;  %v83_v32 = vld [vmem:[#allocation5 + $0x88] sm:$0xff]  ;;  %v137_v34 = vld [vmem:[#allocation5 + $0x180] sm:$0xff]  ;;  %v136_v35 = vld [vmem:[#allocation5 + $0x178] sm:$0xff] }
  0x17   :  { %v138_v33 = vld [vmem:[#allocation5 + $0x188] sm:$0xff]  ;;  %v135_v36 = vld [vmem:[#allocation5 + $0x170] sm:$0xff]  ;;  %v133_v38 = vld [vmem:[#allocation5 + $0x160] sm:$0xff] }
  0x18   :  { %67 = vmatpush.msra.mxu0 %v52_v10  ;;  %106 = vmatpush.msra.mxu1 %v93_v13  ;;  %v134_v37 = vld [vmem:[#allocation5 + $0x168] sm:$0xff]  ;;  %v132_v39 = vld [vmem:[#allocation5 + $0x158] sm:$0xff]  ;;  %v131_v40 = vld [vmem:[#allocation5 + $0x150] sm:$0xff] }
  0x19   :  { %141 = vmatpush.msra.mxu2 %v138_v33  ;;  %v130_v41 = vld [vmem:[#allocation5 + $0x148] sm:$0xff]  ;;  %v129_v42 = vld [vmem:[#allocation5 + $0x140] sm:$0xff]  ;;  %v128_v43 = vld [vmem:[#allocation5 + $0x138] sm:$0xff] }
  0x1a   :  { %68 = vmatpush.msra.mxu0 %v51_v12  ;;  %107 = vmatpush.msra.mxu1 %v92_v15  ;;  %v127_v44 = vld [vmem:[#allocation5 + $0x130] sm:$0xff]  ;;  %v126_v45 = vld [vmem:[#allocation5 + $0x128] sm:$0xff]  ;;  %v185_v46 = vld [vmem:[#allocation5 + $0x80] ss:$0 sm:$0xff] }
  0x1b   :  { %142 = vmatpush.msra.mxu2 %v137_v34  ;;  %v125_v50 = vld [vmem:[#allocation5 + $0x120] sm:$0xff]  ;;  %v124_v51 = vld [vmem:[#allocation5 + $0x118] sm:$0xff]  ;;  %v123_v52 = vld [vmem:[#allocation5 + $0x110] sm:$0xff] }
  0x1c   :  { %69 = vmatpush.msra.mxu0 %v50_v14  ;;  %108 = vmatpush.msra.mxu1 %v91_v17  ;;  %v186_v53 = vld [vmem:[#allocation5 + $0x108] ss:$0 sm:$0xff]  ;;  %v187_v57 = vld [vmem:[#allocation5 + $0x190] ss:$0 sm:$0xff] }
  0x1d   :  { %143 = vmatpush.msra.mxu2 %v136_v35 }
  0x1e   :  { %70 = vmatpush.msra.mxu0 %v49_v16  ;;  %109 = vmatpush.msra.mxu1 %v90_v19 }
  0x1f   :  { %144 = vmatpush.msra.mxu2 %v135_v36 }
  0x20   :  { %71 = vmatpush.msra.mxu0 %v48_v18  ;;  %110 = vmatpush.msra.mxu1 %v89_v21 }
  0x21   :  { %145 = vmatpush.msra.mxu2 %v134_v37 }
  0x22   :  { %72 = vmatpush.msra.mxu0 %v47_v20  ;;  %111 = vmatpush.msra.mxu1 %v88_v23 }
  0x23   :  { %146 = vmatpush.msra.mxu2 %v133_v38 }
  0x24   :  { %73 = vmatpush.msra.mxu0 %v46_v22  ;;  %112 = vmatpush.msra.mxu1 %v87_v25 }
  0x25   :  { %147 = vmatpush.msra.mxu2 %v132_v39 }
  0x26   :  { %74 = vmatpush.msra.mxu0 %v45_v24  ;;  %113 = vmatpush.msra.mxu1 %v86_v27 }
  0x27   :  { %148 = vmatpush.msra.mxu2 %v131_v40 }
  0x28   :  { %75 = vmatpush.msra.mxu0 %v44_v26  ;;  %114 = vmatpush.msra.mxu1 %v85_v30 }
  0x29   :  { %149 = vmatpush.msra.mxu2 %v130_v41 }
  0x2a   :  { %76 = vmatpush.msra.mxu0 %v43_v28  ;;  %115 = vmatpush.msra.mxu1 %v84_v31 }
  0x2b   :  { %77 = vmatmul.f32.vlgmr.msra.gmra.mxu0 %v42_v29  ;;  %150 = vmatpush.msra.mxu2 %v129_v42 }
  0x2c   :  { %116 = vmatpush.msra.mxu1 %v83_v32 }
  0x2d   :  { %151 = vmatpush.msra.mxu2 %v128_v43 }
  0x2f   :  { %152 = vmatpush.msra.mxu2 %v127_v44 }
  0x31   :  { %153 = vmatpush.msra.mxu2 %v126_v45 }
  0x33   :  { %154 = vmatpush.msra.mxu2 %v125_v50 }
  0x35   :  { %155 = vmatpush.msra.mxu2 %v124_v51 }
  0x37   :  { %156 = vmatpush.msra.mxu2 %v123_v52 }
  0xa8   :  { %v78_v47 = vpop.f32.mrf.mxu0 }
  0xa9   :  { %v79_v48 = vadd.f32 %v185_v46, %v78_v47 }
  0xab   :  { %v81_v49 = vmax.f32 %v79_v48, 0.0 }
  0xad   :  { %117 = vmatmul.f32.vlgmr.msra.gmra.mxu1 %v81_v49 }
 0x12a   :  { %v118_v54 = vpop.f32.mrf.mxu1 }
 0x12b   :  { %v119_v55 = vadd.f32 %v186_v53, %v118_v54 }
 0x12d   :  { %v121_v56 = vmax.f32 %v119_v55, 0.0 }
 0x12f   :  { %157 = vmatmul.f32.vlgmr.msra.gmra.mxu2 %v121_v56 }
 0x1b2   :  { %v158_v58 = vpop.f32.mrf.mxu2 }
 0x1b3   :  { %v159_v59 = vadd.f32 %v187_v57, %v158_v58 }
 0x1b5   :  { %161 = vst [vmem:[#allocation7] sm:$0xff] %v159_v59 }
 0x1b6   :  { %172 = dma.vmem_to_hbm [thread:$0]  %s168_s1, 128, %s170_s23, [#allocation4]  }
 0x1b7   :  { %264 = dma.done.wait [#allocation4], 128  }
 0x1b8   :  { %265 = vsyncadd [#allocation4], 4294967168 }
 0x1b9   :  { %177 = vsyncpa [#allocation3], 1 }
 0x1ba   :  { %178 = vsyncpa [#allocation6], 1 }
 0x1bb   :  { %179 = vsyncpa [#allocation4], 1 }

</bundles_post_ra>
